<compile_context>
chip_gen: v6e
topology: v6e:2x2x1
jax: 0.10.0
libtpu: 0.0.40
codegen_flags: <defaults>
</compile_context>

<pallas_src>
import functools
import math

import jax
import jax.numpy as jnp
import numpy as np
from jax.experimental import pallas as pl
from jax.experimental.pallas import tpu as pltpu


def _round_up(v, m):
    return ((v + m - 1) // m) * m


def _pad2(a, r, c):
    """Zero-pad a 2D array up to (r, c)."""
    return jnp.pad(a, ((0, r - a.shape[0]), (0, c - a.shape[1])))


def _vmem_capacity_bytes():
    """Per-core VMEM capacity; conservative 64 MiB fallback (v7x per-TensorCore)."""
    try:
        cap = getattr(pltpu.get_tpu_info(), "vmem_capacity_bytes", None)
        if cap:
            return int(cap)
    except Exception:
        pass
    return 64 * 1024 * 1024


def _weights_vmem_bytes(Cpad, Opad, K, w_bytes, w_bufs):
    b = (Cpad * Cpad + Cpad * Opad) * w_bytes                       # linear1/linear2
    b += (2 * 8 * Cpad + 8 * Opad + _round_up(K, 8) * Cpad) * 4     # biases + conv w (f32)
    return w_bufs * b


def _tile_vmem_bytes(tile_t, Bp, Cpad, Opad, K, in_bytes, out_bytes):
    rows = tile_t * Bp
    halo_rows = (K - 1) * Bp
    rows_ext = rows + halo_rows
    b = 2 * rows * Cpad * in_bytes            # x tile (double-buffered)
    b += 2 * halo_rows * Cpad * in_bytes      # halo rows
    b += 2 * rows_ext * 128 * 4               # validity mask (lane-padded, f32)
    b += 2 * rows * Opad * out_bytes          # output tile
    # in-kernel temporaries: xext concat, f32 yext (+ masked copy), f32 acc (+cast), f32 out
    b += rows_ext * Cpad * in_bytes
    b += 2 * rows_ext * Cpad * 4
    b += 2 * rows * Cpad * 4
    b += rows * Opad * 4
    return b


def _choose_tile_t(T, Bp, Cpad, Opad, K, in_bytes, out_bytes, w_bytes, budget):
    """Largest T-tile whose full VMEM footprint fits, preferring >=2 grid steps
    (pipelining + v7x 2-TC sharding), MXU-friendly row counts and minimal T padding."""
    budget_act = budget - _weights_vmem_bytes(Cpad, Opad, K, w_bytes, 2)  # worst case: 2 bufs
    fits = []
    for tt in range(1, min(T, 32768) + 1):
        if _tile_vmem_bytes(tt, Bp, Cpad, Opad, K, in_bytes, out_bytes) > budget_act:
            break
        fits.append(tt)
    if not fits:
        return 1
    pool = [tt for tt in fits if -(-T // tt) >= 2] or fits
    aligned = [tt for tt in pool if (tt * Bp) % 128 == 0 or tt * Bp >= 512] or pool
    # minimize padded time steps, then take the largest tile (fewest grid steps)
    return min(aligned, key=lambda tt: (-(-T // tt) * tt, -tt))


# ----------------------------- Pallas kernel ---------------------------------
def lconv_kernel(*refs, rows, Bp, K, P, L, mxu_dtype, has_halo):
    """
    refs (has_halo=True):
      x_ref:    (rows, Cpad)        current T-tile, rows = tile_t * Bp   (compute dtype)
      halo_ref: ((K-1)*Bp, Cpad)    raw-x halo rows: P "past" times then L "future" times
      mask_ref: (rows_ext, 1) f32   1.0 where the extended time index is inside [0, T)
      w1_ref:   (Cpad, Cpad)        linear1 weight (in, out), already in MXU dtype
      b1_ref:   (1, Cpad) f32
      cw_ref:   (K, Cpad) f32       softmaxed + per-channel expanded conv weights
      cb_ref:   (1, Cpad) f32
      w2_ref:   (Cpad, Opad)        linear2 weight (in, out), already in MXU dtype
      b2_ref:   (1, Opad) f32
      o_ref:    (rows, Opad)        lane-dense output tile
    """
    if has_halo:
        (x_ref, halo_ref, mask_ref, w1_ref, b1_ref, cw_ref, cb_ref,
         w2_ref, b2_ref, o_ref) = refs
        halo = halo_ref[...]
        pieces = []
        if P > 0:
            pieces.append(halo[:P * Bp])          # past times
        pieces.append(x_ref[...])
        if L > 0:
            pieces.append(halo[P * Bp:])          # future times
        xext = jnp.concatenate(pieces, axis=0)    # (rows_ext, Cpad), 8-row aligned pieces
    else:
        (x_ref, mask_ref, w1_ref, b1_ref, cw_ref, cb_ref,
         w2_ref, b2_ref, o_ref) = refs
        xext = x_ref[...]

    # linear1 on tile + halo in ONE MXU call (f32 accumulation). The mask zeroes rows the
    # reference obtains by zero-padding the post-linear1 activations (and T-padded rows).
    yext = jnp.dot(xext, w1_ref[...], preferred_element_type=jnp.float32) + b1_ref[...]
    yext = yext * mask_ref[...]

    # lightweight conv = K sublane-aligned row-shifted MACs (f32 on the VPU)
    cw = cw_ref[...]
    acc = yext[:rows] * cw[0:1]
    for k in range(1, K):                         # K is static -> unrolled
        acc = acc + yext[k * Bp:k * Bp + rows] * cw[k:k + 1]
    acc = acc + cb_ref[...]

    # linear2 (MXU, f32 accumulation)
    out = jnp.dot(acc.astype(mxu_dtype), w2_ref[...],
                  preferred_element_type=jnp.float32) + b2_ref[...]
    o_ref[...] = out.astype(o_ref.dtype)


# ------------------------------ Python wrapper --------------------------------
def lightweight_conv1d_tbc(x, params, *, kernel_size, padding_l, num_heads,
                           tile_t=None, compute_dtype=jnp.float32,
                           out_dtype=jnp.float32):
    """x: (T, B, C). Returns (T, B, out_dim) in out_dtype.

    compute_dtype controls activation I/O and MXU operand dtype (bf16 recommended on
    v6e/v7x -- matmul accumulation and conv-tap math stay f32, so expect bf16-level
    rounding of the result when it is used)."""
    T, B, C = x.shape
    K, P, H = kernel_size, padding_l, num_heads
    L = K - 1 - P
    R = C // H
    assert R * H == C
    assert 0 <= P <= K - 1

    O = params["linear2_w"].shape[0]
    Cpad = _round_up(C, 128)          # lane-dense channels
    Opad = _round_up(O, 128)          # lane-dense output (unmasked vst)
    Bp = _round_up(B, 8)              # sublane-aligned batch -> aligned conv-tap shifts

    in_bytes = np.dtype(compute_dtype).itemsize
    w_bytes = in_bytes
    out_bytes = np.dtype(out_dtype).itemsize

    # ---- weights prepared once: softmax, head->channel expand, pad, MXU dtype cast ----
    w1 = _pad2(params["linear1_w"].T, Cpad, Cpad).astype(compute_dtype)   # (Cpad,Cpad) in->out
    b1 = _pad2(params["linear1_b"].reshape(1, -1), 1, Cpad)               # f32
    w = jax.nn.softmax(params["conv_w"].reshape(H, K).astype(jnp.float32), axis=1)
    cw = _pad2(jnp.repeat(w, R, axis=0).T, K, Cpad)                       # (K, Cpad) f32
    cb = _pad2(params["conv_b"].reshape(1, -1), 1, Cpad)                  # f32
    w2 = _pad2(params["linear2_w"].T, Cpad, Opad).astype(compute_dtype)   # (Cpad, Opad)
    b2 = _pad2(params["linear2_b"].reshape(1, -1), 1, Opad)               # f32
    # TODO(synk): weight_dropout (DropConnect) is a no-op at inference (p=0.0), omitted.

    # ---- generation-aware VMEM budget & tile selection ----
    cap = _vmem_capacity_bytes()
    vmem_limit = max(32 * 1024 * 1024, min(cap * 3 // 4, 96 * 1024 * 1024))
    if tile_t is None:
        tile_t = _choose_tile_t(T, Bp, Cpad, Opad, K, in_bytes, out_bytes, w_bytes,
                                int(vmem_limit * 0.85))
    nT = -(-T // tile_t)
    Tp = nT * tile_t
    rows = tile_t * Bp
    halo_rows = (K - 1) * Bp
    rows_ext = rows + halo_rows

    # ---- flat lane-dense activations (single pad+cast pass; no-op when aligned) ----
    if (Tp, Bp, Cpad) == (T, B, C) and x.dtype == compute_dtype:
        x_pad = x
    else:
        x_pad = jnp.pad(x.astype(compute_dtype),
                        ((0, Tp - T), (0, Bp - B), (0, Cpad - C)))
    x_flat = x_pad.reshape(Tp * Bp, Cpad)

    inputs = [x_flat]
    t0 = np.arange(nT) * tile_t                                   # tile start times

    if K > 1:
        # per-tile halo rows, gathered with clipped indices (no full time-padded copy);
        # the mask below zeroes anything that is actually outside [0, T)
        off = np.concatenate([np.arange(P) - P, tile_t + np.arange(L)])   # (K-1,)
        halo_t = np.clip(t0[:, None] + off[None, :], 0, T - 1)
        halo = x_pad[jnp.asarray(halo_t)].reshape(nT, halo_rows, Cpad)
        inputs.append(halo)

    # validity of the (tile_t + K - 1) extended time positions per tile, per batch row
    ext_t = t0[:, None] - P + np.arange(tile_t + K - 1)[None, :]
    valid = ((ext_t >= 0) & (ext_t < T)).astype(np.float32)
    mask = jnp.asarray(np.repeat(valid, Bp, axis=1).reshape(nT, rows_ext, 1))
    inputs.append(mask)
    inputs += [w1, b1, cw, cb, w2, b2]

    kernel = functools.partial(lconv_kernel, rows=rows, Bp=Bp, K=K, P=P, L=L,
                               mxu_dtype=compute_dtype, has_halo=(K > 1))

    def run(single_buffer_weights):
        def const(shape):
            kw = {"pipeline_mode": pl.Buffered(1)} if single_buffer_weights else {}
            return pl.BlockSpec(shape, lambda i, _n=len(shape): (0,) * _n, **kw)

        in_specs = [pl.BlockSpec((rows, Cpad), lambda i: (i, 0))]
        if K > 1:
            in_specs.append(pl.BlockSpec((None, halo_rows, Cpad), lambda i: (i, 0, 0)))
        in_specs.append(pl.BlockSpec((None, rows_ext, 1), lambda i: (i, 0, 0)))
        in_specs += [const((Cpad, Cpad)), const((1, Cpad)), const((K, Cpad)),
                     const((1, Cpad)), const((Cpad, Opad)), const((1, Opad))]

        return pl.pallas_call(
            kernel,
            out_shape=jax.ShapeDtypeStruct((Tp * Bp, Opad), out_dtype),
            grid=(nT,),
            in_specs=in_specs,
            out_specs=pl.BlockSpec((rows, Opad), lambda i: (i, 0)),
            compiler_params=pltpu.CompilerParams(
                dimension_semantics=("parallel",),     # T-tiles shard across v7x's 2 TCs
                vmem_limit_bytes=int(vmem_limit)),
        )(*inputs)

    try:
        out_flat = run(True)            # single-buffered resident weights
    except Exception:                   # fallback if Buffered(1) is rejected by this jax
        out_flat = run(False)

    out = out_flat.reshape(Tp, Bp, Opad)
    if (Tp, Bp, Opad) != (T, B, O):
        out = out[:T, :B, :O]
    return out


# --------------------------- pure-JAX reference --------------------------------
def reference_forward(x, params, *, kernel_size, padding_l, num_heads):
    T, B, C = x.shape
    K, P, H = kernel_size, padding_l, num_heads
    R = C // H
    y = x @ params["linear1_w"].T + params["linear1_b"]
    w = jax.nn.softmax(params["conv_w"].reshape(H, K).astype(jnp.float32), axis=1)
    wc = jnp.repeat(w, R, axis=0)                      # (C, K)
    ypad = jnp.pad(y, ((P, K - 1 - P), (0, 0), (0, 0)))
    out = sum(ypad[k:k + T] * wc[:, k][None, None, :] for k in range(K))
    out = out + params["conv_b"]
    return out @ params["linear2_w"].T + params["linear2_b"]


# --------------------------- deterministic init --------------------------------
def xavier_uniform(key, shape, fan_in, fan_out):
    bound = math.sqrt(6.0 / (fan_in + fan_out))
    return jax.random.uniform(key, shape, jnp.float32, -bound, bound)


def init_params(key, input_size, out_dim, kernel_size, num_heads):
    k1, k2, k3 = jax.random.split(key, 3)
    return {
        "conv_w": xavier_uniform(k1, (num_heads, 1, kernel_size),
                                 kernel_size, num_heads * kernel_size),
        "conv_b": jnp.zeros((input_size,), jnp.float32),
        "linear1_w": xavier_uniform(k2, (input_size, input_size),
                                    input_size, input_size),
        "linear1_b": jnp.zeros((input_size,), jnp.float32),
        "linear2_w": xavier_uniform(k3, (out_dim, input_size),
                                    input_size, out_dim),
        "linear2_b": jnp.zeros((out_dim,), jnp.float32),
    }


if __name__ == "__main__":
    T, B, C = 8, 2, 32          # (timesteps, batch, input_size)
    H, K = 4, 3                 # num_heads, kernel_size
    OUT = 32

    key = jax.random.PRNGKey(0)
    kx, kp = jax.random.split(key)
    x = jax.random.normal(kx, (T, B, C), jnp.float32)
    params = init_params(kp, C, OUT, K, H)

    # 1) causal padding (padding_l = K-1), f32 exact path, automatic tile selection.
    P = K - 1
    ref = reference_forward(x, params, kernel_size=K, padding_l=P, num_heads=H)
    out = lightweight_conv1d_tbc(x, params, kernel_size=K, padding_l=P, num_heads=H)
    out = jax.block_until_ready(out)
    np.testing.assert_allclose(np.asarray(out), np.asarray(ref), rtol=1e-5, atol=1e-5)
    assert out.shape == (T, B, OUT)

    # 2) "same"-style padding (padding_l = 1 -> right halo used) with tile_t=3 so T gets
    #    padded to a tile multiple; exercises the mask / halo-clip / tail-slice paths.
    P2 = 1
    ref2 = reference_forward(x, params, kernel_size=K, padding_l=P2, num_heads=H)
    out2 = lightweight_conv1d_tbc(x, params, kernel_size=K, padding_l=P2, num_heads=H,
                                  tile_t=3)
    out2 = jax.block_until_ready(out2)
    np.testing.assert_allclose(np.asarray(out2), np.asarray(ref2), rtol=1e-5, atol=1e-5)

    # 3) bf16 weights + activations on the MXU (f32 accumulation) -> loose tolerance.
    out_bf16 = lightweight_conv1d_tbc(x, params, kernel_size=K, padding_l=P, num_heads=H,
                                      compute_dtype=jnp.bfloat16)
    out_bf16 = jax.block_until_ready(out_bf16)
    np.testing.assert_allclose(np.asarray(out_bf16), np.asarray(ref),
                               rtol=5e-2, atol=5e-2)

    print("KERNEL_OK")
</pallas_src>

<mosaic_0001>
module attributes {stable_mosaic.version = 11 : i64} {
  func.func @lconv_kernel(%arg0: i32, %arg1: memref<32x128xf32, #tpu.memory_space<vmem>>, %arg2: memref<1x16x128xf32, #tpu.memory_space<vmem>>, %arg3: memref<1x48x1xf32, #tpu.memory_space<vmem>>, %arg4: memref<128x128xf32, #tpu.memory_space<vmem>>, %arg5: memref<1x128xf32, #tpu.memory_space<vmem>>, %arg6: memref<3x128xf32, #tpu.memory_space<vmem>>, %arg7: memref<1x128xf32, #tpu.memory_space<vmem>>, %arg8: memref<128x128xf32, #tpu.memory_space<vmem>>, %arg9: memref<1x128xf32, #tpu.memory_space<vmem>>, %arg10: memref<32x128xf32, #tpu.memory_space<vmem>>) attributes {dimension_semantics = [#tpu.dimension_semantics<parallel>], iteration_bounds = array<i64: 2>, scalar_prefetch = 0 : i64, scratch_operands = 0 : i64, tpu.core_type = #tpu.core_type<tc>, window_params = [{transform_indices = @transform_0, window_bounds = array<i64: 32, 128>}, {transform_indices = @transform_1, window_bounds = array<i64: 1, 16, 128>}, {transform_indices = @transform_2, window_bounds = array<i64: 1, 48, 1>}, {pipeline_mode = #tpu.pipeline_mode<synchronous>, transform_indices = @transform_3, window_bounds = array<i64: 128, 128>}, {pipeline_mode = #tpu.pipeline_mode<synchronous>, transform_indices = @transform_4, window_bounds = array<i64: 1, 128>}, {pipeline_mode = #tpu.pipeline_mode<synchronous>, transform_indices = @transform_5, window_bounds = array<i64: 3, 128>}, {pipeline_mode = #tpu.pipeline_mode<synchronous>, transform_indices = @transform_6, window_bounds = array<i64: 1, 128>}, {pipeline_mode = #tpu.pipeline_mode<synchronous>, transform_indices = @transform_7, window_bounds = array<i64: 128, 128>}, {pipeline_mode = #tpu.pipeline_mode<synchronous>, transform_indices = @transform_8, window_bounds = array<i64: 1, 128>}, {transform_indices = @transform_9, window_bounds = array<i64: 32, 128>}]} {
    %c0 = arith.constant 0 : index
    %c0_0 = arith.constant 0 : index
    %c0_1 = arith.constant 0 : index
    %0 = vector.load %arg2[%c0, %c0_0, %c0_1] : memref<1x16x128xf32, #tpu.memory_space<vmem>>, vector<1x16x128xf32>
    %1 = vector.shape_cast %0 : vector<1x16x128xf32> to vector<16x128xf32>
    %c0_2 = arith.constant 0 : index
    %c0_3 = arith.constant 0 : index
    %2 = vector.load %arg1[%c0_2, %c0_3] : memref<32x128xf32, #tpu.memory_space<vmem>>, vector<32x128xf32>
    %3 = tpu.concatenate %1, %2 in 0 : vector<16x128xf32>, vector<32x128xf32> -> vector<48x128xf32>
    %c0_4 = arith.constant 0 : index
    %c0_5 = arith.constant 0 : index
    %4 = vector.load %arg4[%c0_4, %c0_5] : memref<128x128xf32, #tpu.memory_space<vmem>>, vector<128x128xf32>
    %cst = arith.constant dense<0.000000e+00> : vector<48x128xf32>
    %5 = tpu.matmul %3, %4, %cst {dimension_numbers = #tpu.dot_dimension_numbers<[1], [0], [0], [1], [0, 0, 1, 1], [], []>} : vector<48x128xf32>, vector<128x128xf32>, vector<48x128xf32> -> vector<48x128xf32>
    %c0_6 = arith.constant 0 : index
    %c0_7 = arith.constant 0 : index
    %6 = vector.load %arg5[%c0_6, %c0_7] : memref<1x128xf32, #tpu.memory_space<vmem>>, vector<1x128xf32>
    %7 = vector.broadcast %6 : vector<1x128xf32> to vector<48x128xf32>
    %8 = arith.addf %5, %7 : vector<48x128xf32>
    %c0_8 = arith.constant 0 : index
    %c0_9 = arith.constant 0 : index
    %c0_10 = arith.constant 0 : index
    %9 = vector.load %arg3[%c0_8, %c0_9, %c0_10] : memref<1x48x1xf32, #tpu.memory_space<vmem>>, vector<1x48x1xf32>
    %10 = vector.shape_cast %9 : vector<1x48x1xf32> to vector<48x1xf32>
    %11 = vector.broadcast %10 : vector<48x1xf32> to vector<48x128xf32>
    %12 = arith.mulf %8, %11 : vector<48x128xf32>
    %c0_11 = arith.constant 0 : index
    %c0_12 = arith.constant 0 : index
    %13 = vector.load %arg6[%c0_11, %c0_12] : memref<3x128xf32, #tpu.memory_space<vmem>>, vector<3x128xf32>
    %14 = vector.extract_strided_slice %12 {offsets = [0, 0], sizes = [32, 128], strides = [1, 1]} : vector<48x128xf32> to vector<32x128xf32>
    %15 = vector.extract_strided_slice %13 {offsets = [0, 0], sizes = [1, 128], strides = [1, 1]} : vector<3x128xf32> to vector<1x128xf32>
    %16 = vector.broadcast %15 : vector<1x128xf32> to vector<32x128xf32>
    %17 = arith.mulf %14, %16 : vector<32x128xf32>
    %18 = vector.extract_strided_slice %12 {offsets = [8, 0], sizes = [32, 128], strides = [1, 1]} : vector<48x128xf32> to vector<32x128xf32>
    %19 = vector.extract_strided_slice %13 {offsets = [1, 0], sizes = [1, 128], strides = [1, 1]} : vector<3x128xf32> to vector<1x128xf32>
    %20 = vector.broadcast %19 : vector<1x128xf32> to vector<32x128xf32>
    %21 = arith.mulf %18, %20 : vector<32x128xf32>
    %22 = arith.addf %17, %21 : vector<32x128xf32>
    %23 = vector.extract_strided_slice %12 {offsets = [16, 0], sizes = [32, 128], strides = [1, 1]} : vector<48x128xf32> to vector<32x128xf32>
    %24 = vector.extract_strided_slice %13 {offsets = [2, 0], sizes = [1, 128], strides = [1, 1]} : vector<3x128xf32> to vector<1x128xf32>
    %25 = vector.broadcast %24 : vector<1x128xf32> to vector<32x128xf32>
    %26 = arith.mulf %23, %25 : vector<32x128xf32>
    %27 = arith.addf %22, %26 : vector<32x128xf32>
    %c0_13 = arith.constant 0 : index
    %c0_14 = arith.constant 0 : index
    %28 = vector.load %arg7[%c0_13, %c0_14] : memref<1x128xf32, #tpu.memory_space<vmem>>, vector<1x128xf32>
    %29 = vector.broadcast %28 : vector<1x128xf32> to vector<32x128xf32>
    %30 = arith.addf %27, %29 : vector<32x128xf32>
    %c0_15 = arith.constant 0 : index
    %c0_16 = arith.constant 0 : index
    %31 = vector.load %arg8[%c0_15, %c0_16] : memref<128x128xf32, #tpu.memory_space<vmem>>, vector<128x128xf32>
    %cst_17 = arith.constant dense<0.000000e+00> : vector<32x128xf32>
    %32 = tpu.matmul %30, %31, %cst_17 {dimension_numbers = #tpu.dot_dimension_numbers<[1], [0], [0], [1], [0, 0, 1, 1], [], []>} : vector<32x128xf32>, vector<128x128xf32>, vector<32x128xf32> -> vector<32x128xf32>
    %c0_18 = arith.constant 0 : index
    %c0_19 = arith.constant 0 : index
    %33 = vector.load %arg9[%c0_18, %c0_19] : memref<1x128xf32, #tpu.memory_space<vmem>>, vector<1x128xf32>
    %34 = vector.broadcast %33 : vector<1x128xf32> to vector<32x128xf32>
    %35 = arith.addf %32, %34 : vector<32x128xf32>
    %c0_20 = arith.constant 0 : index
    %c0_21 = arith.constant 0 : index
    %36 = vector.load %arg10[%c0_20, %c0_21] : memref<32x128xf32, #tpu.memory_space<vmem>>, vector<32x128xf32>
    tpu.vector_store %arg10[%c0_20, %c0_21], %35 {strides = array<i32>} : memref<32x128xf32, #tpu.memory_space<vmem>>, vector<32x128xf32>,
    return
  }
  func.func @transform_0(%arg0: i32) -> (i32, i32) {
    %c0_i32 = arith.constant 0 : i32
    %c0_i32_0 = arith.constant 0 : i32
    return %arg0, %c0_i32 : i32, i32
  }
  func.func @transform_1(%arg0: i32) -> (i32, i32, i32) {
    %c0_i32 = arith.constant 0 : i32
    %c0_i32_0 = arith.constant 0 : i32
    %c0_i32_1 = arith.constant 0 : i32
    return %arg0, %c0_i32, %c0_i32_0 : i32, i32, i32
  }
  func.func @transform_2(%arg0: i32) -> (i32, i32, i32) {
    %c0_i32 = arith.constant 0 : i32
    %c0_i32_0 = arith.constant 0 : i32
    %c0_i32_1 = arith.constant 0 : i32
    return %arg0, %c0_i32, %c0_i32_0 : i32, i32, i32
  }
  func.func @transform_3(%arg0: i32) -> (i32, i32) {
    %c0_i32 = arith.constant 0 : i32
    %c0_i32_0 = arith.constant 0 : i32
    %c0_i32_1 = arith.constant 0 : i32
    return %c0_i32, %c0_i32_0 : i32, i32
  }
  func.func @transform_4(%arg0: i32) -> (i32, i32) {
    %c0_i32 = arith.constant 0 : i32
    %c0_i32_0 = arith.constant 0 : i32
    %c0_i32_1 = arith.constant 0 : i32
    return %c0_i32, %c0_i32_0 : i32, i32
  }
  func.func @transform_5(%arg0: i32) -> (i32, i32) {
    %c0_i32 = arith.constant 0 : i32
    %c0_i32_0 = arith.constant 0 : i32
    %c0_i32_1 = arith.constant 0 : i32
    return %c0_i32, %c0_i32_0 : i32, i32
  }
  func.func @transform_6(%arg0: i32) -> (i32, i32) {
    %c0_i32 = arith.constant 0 : i32
    %c0_i32_0 = arith.constant 0 : i32
    %c0_i32_1 = arith.constant 0 : i32
    return %c0_i32, %c0_i32_0 : i32, i32
  }
  func.func @transform_7(%arg0: i32) -> (i32, i32) {
    %c0_i32 = arith.constant 0 : i32
    %c0_i32_0 = arith.constant 0 : i32
    %c0_i32_1 = arith.constant 0 : i32
    return %c0_i32, %c0_i32_0 : i32, i32
  }
  func.func @transform_8(%arg0: i32) -> (i32, i32) {
    %c0_i32 = arith.constant 0 : i32
    %c0_i32_0 = arith.constant 0 : i32
    %c0_i32_1 = arith.constant 0 : i32
    return %c0_i32, %c0_i32_0 : i32, i32
  }
  func.func @transform_9(%arg0: i32) -> (i32, i32) {
    %c0_i32 = arith.constant 0 : i32
    %c0_i32_0 = arith.constant 0 : i32
    return %arg0, %c0_i32 : i32, i32
  }
}

module attributes {stable_mosaic.version = 11 : i64} {
  func.func @lconv_kernel(%arg0: i32, %arg1: memref<32x128xf32, #tpu.memory_space<vmem>>, %arg2: memref<1x16x128xf32, #tpu.memory_space<vmem>>, %arg3: memref<1x48x1xf32, #tpu.memory_space<vmem>>, %arg4: memref<128x128xf32, #tpu.memory_space<vmem>>, %arg5: memref<1x128xf32, #tpu.memory_space<vmem>>, %arg6: memref<3x128xf32, #tpu.memory_space<vmem>>, %arg7: memref<1x128xf32, #tpu.memory_space<vmem>>, %arg8: memref<128x128xf32, #tpu.memory_space<vmem>>, %arg9: memref<1x128xf32, #tpu.memory_space<vmem>>, %arg10: memref<32x128xf32, #tpu.memory_space<vmem>>) attributes {dimension_semantics = [#tpu.dimension_semantics<parallel>], iteration_bounds = array<i64: 2>, scalar_prefetch = 0 : i64, scratch_operands = 0 : i64, tpu.core_type = #tpu.core_type<tc>, window_params = [{transform_indices = @transform_0, window_bounds = array<i64: 32, 128>}, {transform_indices = @transform_1, window_bounds = array<i64: 1, 16, 128>}, {transform_indices = @transform_2, window_bounds = array<i64: 1, 48, 1>}, {pipeline_mode = #tpu.pipeline_mode<synchronous>, transform_indices = @transform_3, window_bounds = array<i64: 128, 128>}, {pipeline_mode = #tpu.pipeline_mode<synchronous>, transform_indices = @transform_4, window_bounds = array<i64: 1, 128>}, {pipeline_mode = #tpu.pipeline_mode<synchronous>, transform_indices = @transform_5, window_bounds = array<i64: 3, 128>}, {pipeline_mode = #tpu.pipeline_mode<synchronous>, transform_indices = @transform_6, window_bounds = array<i64: 1, 128>}, {pipeline_mode = #tpu.pipeline_mode<synchronous>, transform_indices = @transform_7, window_bounds = array<i64: 128, 128>}, {pipeline_mode = #tpu.pipeline_mode<synchronous>, transform_indices = @transform_8, window_bounds = array<i64: 1, 128>}, {transform_indices = @transform_9, window_bounds = array<i64: 32, 128>}]} {
    %c0 = arith.constant 0 : index
    %c0_0 = arith.constant 0 : index
    %c0_1 = arith.constant 0 : index
    %0 = vector.load %arg2[%c0, %c0_0, %c0_1] : memref<1x16x128xf32, #tpu.memory_space<vmem>>, vector<1x16x128xf32>
    %1 = vector.shape_cast %0 : vector<1x16x128xf32> to vector<16x128xf32>
    %c0_2 = arith.constant 0 : index
    %c0_3 = arith.constant 0 : index
    %2 = vector.load %arg1[%c0_2, %c0_3] : memref<32x128xf32, #tpu.memory_space<vmem>>, vector<32x128xf32>
    %3 = tpu.concatenate %1, %2 in 0 : vector<16x128xf32>, vector<32x128xf32> -> vector<48x128xf32>
    %c0_4 = arith.constant 0 : index
    %c0_5 = arith.constant 0 : index
    %4 = vector.load %arg4[%c0_4, %c0_5] : memref<128x128xf32, #tpu.memory_space<vmem>>, vector<128x128xf32>
    %cst = arith.constant dense<0.000000e+00> : vector<48x128xf32>
    %5 = tpu.matmul %3, %4, %cst {dimension_numbers = #tpu.dot_dimension_numbers<[1], [0], [0], [1], [0, 0, 1, 1], [], []>} : vector<48x128xf32>, vector<128x128xf32>, vector<48x128xf32> -> vector<48x128xf32>
    %c0_6 = arith.constant 0 : index
    %c0_7 = arith.constant 0 : index
    %6 = vector.load %arg5[%c0_6, %c0_7] : memref<1x128xf32, #tpu.memory_space<vmem>>, vector<1x128xf32>
    %7 = vector.broadcast %6 : vector<1x128xf32> to vector<48x128xf32>
    %8 = arith.addf %5, %7 : vector<48x128xf32>
    %c0_8 = arith.constant 0 : index
    %c0_9 = arith.constant 0 : index
    %c0_10 = arith.constant 0 : index
    %9 = vector.load %arg3[%c0_8, %c0_9, %c0_10] : memref<1x48x1xf32, #tpu.memory_space<vmem>>, vector<1x48x1xf32>
    %10 = vector.shape_cast %9 : vector<1x48x1xf32> to vector<48x1xf32>
    %11 = vector.broadcast %10 : vector<48x1xf32> to vector<48x128xf32>
    %12 = arith.mulf %8, %11 : vector<48x128xf32>
    %c0_11 = arith.constant 0 : index
    %c0_12 = arith.constant 0 : index
    %13 = vector.load %arg6[%c0_11, %c0_12] : memref<3x128xf32, #tpu.memory_space<vmem>>, vector<3x128xf32>
    %14 = vector.extract_strided_slice %12 {offsets = [0, 0], sizes = [32, 128], strides = [1, 1]} : vector<48x128xf32> to vector<32x128xf32>
    %15 = vector.extract_strided_slice %13 {offsets = [0, 0], sizes = [1, 128], strides = [1, 1]} : vector<3x128xf32> to vector<1x128xf32>
    %16 = vector.broadcast %15 : vector<1x128xf32> to vector<32x128xf32>
    %17 = arith.mulf %14, %16 : vector<32x128xf32>
    %18 = vector.extract_strided_slice %12 {offsets = [8, 0], sizes = [32, 128], strides = [1, 1]} : vector<48x128xf32> to vector<32x128xf32>
    %19 = vector.extract_strided_slice %13 {offsets = [1, 0], sizes = [1, 128], strides = [1, 1]} : vector<3x128xf32> to vector<1x128xf32>
    %20 = vector.broadcast %19 : vector<1x128xf32> to vector<32x128xf32>
    %21 = arith.mulf %18, %20 : vector<32x128xf32>
    %22 = arith.addf %17, %21 : vector<32x128xf32>
    %23 = vector.extract_strided_slice %12 {offsets = [16, 0], sizes = [32, 128], strides = [1, 1]} : vector<48x128xf32> to vector<32x128xf32>
    %24 = vector.extract_strided_slice %13 {offsets = [2, 0], sizes = [1, 128], strides = [1, 1]} : vector<3x128xf32> to vector<1x128xf32>
    %25 = vector.broadcast %24 : vector<1x128xf32> to vector<32x128xf32>
    %26 = arith.mulf %23, %25 : vector<32x128xf32>
    %27 = arith.addf %22, %26 : vector<32x128xf32>
    %c0_13 = arith.constant 0 : index
    %c0_14 = arith.constant 0 : index
    %28 = vector.load %arg7[%c0_13, %c0_14] : memref<1x128xf32, #tpu.memory_space<vmem>>, vector<1x128xf32>
    %29 = vector.broadcast %28 : vector<1x128xf32> to vector<32x128xf32>
    %30 = arith.addf %27, %29 : vector<32x128xf32>
    %c0_15 = arith.constant 0 : index
    %c0_16 = arith.constant 0 : index
    %31 = vector.load %arg8[%c0_15, %c0_16] : memref<128x128xf32, #tpu.memory_space<vmem>>, vector<128x128xf32>
    %cst_17 = arith.constant dense<0.000000e+00> : vector<32x128xf32>
    %32 = tpu.matmul %30, %31, %cst_17 {dimension_numbers = #tpu.dot_dimension_numbers<[1], [0], [0], [1], [0, 0, 1, 1], [], []>} : vector<32x128xf32>, vector<128x128xf32>, vector<32x128xf32> -> vector<32x128xf32>
    %c0_18 = arith.constant 0 : index
    %c0_19 = arith.constant 0 : index
    %33 = vector.load %arg9[%c0_18, %c0_19] : memref<1x128xf32, #tpu.memory_space<vmem>>, vector<1x128xf32>
    %34 = vector.broadcast %33 : vector<1x128xf32> to vector<32x128xf32>
    %35 = arith.addf %32, %34 : vector<32x128xf32>
    %c0_20 = arith.constant 0 : index
    %c0_21 = arith.constant 0 : index
    %36 = vector.load %arg10[%c0_20, %c0_21] : memref<32x128xf32, #tpu.memory_space<vmem>>, vector<32x128xf32>
    tpu.vector_store %arg10[%c0_20, %c0_21], %35 {strides = array<i32>} : memref<32x128xf32, #tpu.memory_space<vmem>>, vector<32x128xf32>,
    return
  }
  func.func @transform_0(%arg0: i32) -> (i32, i32) {
    %c0_i32 = arith.constant 0 : i32
    %c0_i32_0 = arith.constant 0 : i32
    return %arg0, %c0_i32 : i32, i32
  }
  func.func @transform_1(%arg0: i32) -> (i32, i32, i32) {
    %c0_i32 = arith.constant 0 : i32
    %c0_i32_0 = arith.constant 0 : i32
    %c0_i32_1 = arith.constant 0 : i32
    return %arg0, %c0_i32, %c0_i32_0 : i32, i32, i32
  }
  func.func @transform_2(%arg0: i32) -> (i32, i32, i32) {
    %c0_i32 = arith.constant 0 : i32
    %c0_i32_0 = arith.constant 0 : i32
    %c0_i32_1 = arith.constant 0 : i32
    return %arg0, %c0_i32, %c0_i32_0 : i32, i32, i32
  }
  func.func @transform_3(%arg0: i32) -> (i32, i32) {
    %c0_i32 = arith.constant 0 : i32
    %c0_i32_0 = arith.constant 0 : i32
    %c0_i32_1 = arith.constant 0 : i32
    return %c0_i32, %c0_i32_0 : i32, i32
  }
  func.func @transform_4(%arg0: i32) -> (i32, i32) {
    %c0_i32 = arith.constant 0 : i32
    %c0_i32_0 = arith.constant 0 : i32
    %c0_i32_1 = arith.constant 0 : i32
    return %c0_i32, %c0_i32_0 : i32, i32
  }
  func.func @transform_5(%arg0: i32) -> (i32, i32) {
    %c0_i32 = arith.constant 0 : i32
    %c0_i32_0 = arith.constant 0 : i32
    %c0_i32_1 = arith.constant 0 : i32
    return %c0_i32, %c0_i32_0 : i32, i32
  }
  func.func @transform_6(%arg0: i32) -> (i32, i32) {
    %c0_i32 = arith.constant 0 : i32
    %c0_i32_0 = arith.constant 0 : i32
    %c0_i32_1 = arith.constant 0 : i32
    return %c0_i32, %c0_i32_0 : i32, i32
  }
  func.func @transform_7(%arg0: i32) -> (i32, i32) {
    %c0_i32 = arith.constant 0 : i32
    %c0_i32_0 = arith.constant 0 : i32
    %c0_i32_1 = arith.constant 0 : i32
    return %c0_i32, %c0_i32_0 : i32, i32
  }
  func.func @transform_8(%arg0: i32) -> (i32, i32) {
    %c0_i32 = arith.constant 0 : i32
    %c0_i32_0 = arith.constant 0 : i32
    %c0_i32_1 = arith.constant 0 : i32
    return %c0_i32, %c0_i32_0 : i32, i32
  }
  func.func @transform_9(%arg0: i32) -> (i32, i32) {
    %c0_i32 = arith.constant 0 : i32
    %c0_i32_0 = arith.constant 0 : i32
    return %arg0, %c0_i32 : i32, i32
  }
}

</mosaic_0001>

<bundles_post_ra>
// kernel: tpu_custom_call.1
= control target key start
LH: loop header
LB: loop body
LE: loop exit
PB: predicated region body
PF: predicated region fallthrough
CT: control target
= control target key end

     0   :  { %14 = vsyncpa [#allocation3], 0  ;;  %s1415_s0 = inlined_call_operand.vmem [shape: f32[64,128], index: 0, kind: input, shape index: {}]   ;;  %s1416_s1 = inlined_call_operand.vmem [shape: f32[2,16,128], index: 1, kind: input, shape index: {}]   ;;  %s1417_s2 = inlined_call_operand.vmem [shape: f32[2,48,1], index: 2, kind: input, shape index: {}]   ;;  %s1418_s3 = inlined_call_operand.hbm [shape: f32[128,128], index: 3, kind: input, shape index: {}]   ;;  %s1419_s4 = inlined_call_operand.vmem [shape: f32[1,128], index: 4, kind: input, shape index: {}]   ;;  %s1420_s5 = inlined_call_operand.vmem [shape: f32[3,128], index: 5, kind: input, shape index: {}]   ;;  %s1421_s6 = inlined_call_operand.vmem [shape: f32[1,128], index: 6, kind: input, shape index: {}]   ;;  %s1422_s7 = inlined_call_operand.hbm [shape: f32[128,128], index: 7, kind: input, shape index: {}]   ;;  %s1423_s8 = inlined_call_operand.vmem [shape: f32[1,128], index: 8, kind: input, shape index: {}]   ;;  %s1424_s9 = inlined_call_operand.hbm [shape: f32[64,128], index: 9, kind: output, shape index: {}]  }
   0x1   :  { %15 = vsyncpa [#allocation6], 0 }
   0x2   :  { %16 = vsyncpa [#allocation4], 0 }
   0x3   :  { %18 = vsyncpa [#allocation4 + $0x1], 0  ;;  %s1241_s30 = smov 0   ;;  %s1243_s10 = smov 0  }
   0x4   :  { %s1245_s11 = smov 0   ;;  %s1247_s12 = smov 0  }
   0x5 LB: > { %s1262_s13 = sadd.s32 4294967295, %s1181_s12   ;;  %s848_s14 = sadd.s32 4294967294, %s1181_s12   ;;  %s1181_s12 = sphi %s1247_s12, %s1438_s12   ;;  %s1177_s11 = sphi %s1245_s11, %s1437_s11   ;;  %s1173_s10 = sphi %s1243_s10, %s1436_s10   ;;  %s1169_s30 = sphi %s1241_s30, %s1435_s30  }
   0x6   : > { %s1266_s15 = sadd.s32 1, %s1181_s12   ;;  %s235_s16 = sadd.s32 1, %s1177_s11 }
   0x7   : > { %s232_s17 = ssub.s32 %s1181_s12, %s1266_s15  ;;  %p245_p0 = scmp.ne.s32.totalorder %s1177_s11, %s1173_s10 }
   0x8   : > { %p233_p1 = scmp.eq.s32.totalorder %s232_s17, 0  ;;  %p246_p2 = scmp.eq.s32.totalorder %s1262_s13, 1 }
   0x9   : > { %p251_p3 = scmp.ne.s32.totalorder %s1173_s10, %s1169_s30  ;;  %p252_p4 = scmp.eq.s32.totalorder %s848_s14, 1 }
   0xa   : > { %s1277_s18 = scalar_select %p233_p1, %s1177_s11, %s235_s16  }
   0xb   : > { %p1279_p5 = por %p246_p2, %p245_p0  ;;  %p1283_p6 = por %p252_p4, %p251_p3 }
   0xc   : > { %p849_p7 = scmp.ge.s32.totalorder %s1181_s12, 1  ;;  %p259_p8 = scmp.lt.s32.totalorder %s1181_s12, 3 }
   0xd   : > { %s1427_s20 = scalar_select %p1283_p6, 1, 0 }
   0xe   : > { %p1425_p9 = scmp.eq.s32.totalorder %s1262_s13, 0  ;;  %p1290_p10 = pnand %p849_p7, %p259_p8 }
   0xf   : > { %s1183_s22 = smov [#allocation2]   ;;  %s1184_s25 = smov [#allocation5]  }
  0x10   : > { %s271_s23 = sshll.u32 %s1183_s22, 4  ;;  %p1004_p11 = pneg %p1290_p10  ;;  %s272_s23 = int_to_ptr.vmem [resolvable:$true] %s271_s23 }
  0x11   : > { %s293_s26 = sshll.u32 %s1184_s25, 4  ;;  %s1072_s27 = scalar_lea.vmem %s272_s23, 2048  ;;  %s294_s26 = int_to_ptr.vmem [resolvable:$true] %s293_s26 }
  0x12   : > { %p1298_p12 = pnand %p1425_p9, %p1004_p11  ;;  %p1073_p0 = scmp.ne.s32.totalorder %s272_s23, %s1072_s27 }
  0x13   : > { %p1080_p3 = scmp.lt.s32.totalorder %s272_s23, %s272_s23  ;;  %p1081_p4 = scmp.lt.s32.totalorder %s1072_s27, %s1072_s27 }
  0x14   : > { %p1063_p13 = pneg %p1298_p12 }
  0x15   : > { %p1082_p7 = por %p1081_p4, %p1080_p3 }
  0x16   : > { %p1075_p1 = pnand %p1073_p0, %p1063_p13 }
  0x18   : > { %p1076_p2 = pneg %p1075_p1 }
  0x1a   : > { %p1083_p8 = pnand %p1082_p7, %p1076_p2 }
  0x1c   : > { %1086 = shalt.err (!%p1083_p8)
}
  0x1d   : > { %s1185_s28 = smov 128   ;;  %s1186_s29 = smov 8  }
  0x1e   : > { %1007 = dma.hbm_to_vmem [thread:$0]  (!%p1298_p12), %s1418_s3, 2048, %s272_s23, [#allocation3], %s1185_s28, %s1185_s28, %s1186_s29  }
  0x1f   : > { %s1098_s17 = scalar_lea.vmem %s294_s26, 2048  ;;  %p1106_p9 = scmp.lt.s32.totalorder %s294_s26, %s294_s26 }
  0x20   : > { %p1099_p11 = scmp.ne.s32.totalorder %s294_s26, %s1098_s17  ;;  %p1107_p6 = scmp.lt.s32.totalorder %s1098_s17, %s1098_s17 }
  0x22   : > { %p1101_p0 = pnand %p1099_p11, %p1063_p13  ;;  %p1108_p3 = por %p1107_p6, %p1106_p9 }
  0x24   : > { %p1102_p1 = pneg %p1101_p0 }
  0x26   : > { %p1109_p2 = pnand %p1108_p3, %p1102_p1 }
  0x28   : > { %1112 = shalt.err (!%p1109_p2)
}
  0x29   : > { %1010 = dma.hbm_to_vmem [thread:$0]  (!%p1298_p12), %s1422_s7, 2048, %s294_s26, [#allocation6], %s1185_s28, %s1185_s28, %s1186_s29  }
  0x2a   : > { %337 = sbr.rel (%p1290_p10) target bundleno = 511 (0x1ff), region = 56  ;;  %p1430_p4 = scmp.eq.s32.totalorder (!%p1290_p10), %s1262_s13, 0 }
  0x2f   : > { %1156 = dma.done.wait (%p1430_p4), [#allocation3], 2048   ;;  %p1431_p13 = pmov %p1430_p4 }
  0x30   : > { %p1432_p7 = pmov %p1430_p4 }
  0x31   : > { %1158 = vsyncadd (%p1431_p13), [#allocation3], 4294965248 }
  0x32   : > { %1160 = dma.done.wait (%p1432_p7), [#allocation6], 2048   ;;  %p1433_p6 = pmov %p1430_p4 }
  0x33   : > { %p393_p9 = scmp.lt.s32.totalorder %s1262_s13, 1  ;;  %v1187_v0 = vmov 0   ;;  %v425_v1 = vld [vmem:[#allocation2 + $0x78] sm:$0xff]  ;;  %v424_v2 = vld [vmem:[#allocation2 + $0x70] sm:$0xff]  ;;  %v423_v3 = vld [vmem:[#allocation2 + $0x68] sm:$0xff]  ;;  %s857_s17 = sshll.u32 %s1262_s13, 2  ;;  %v571_v45 = vlaneseq }
  0x34   : > { %1162 = vsyncadd (%p1433_p6), [#allocation6], 4294965248  ;;  %1059 = vset.pattern.permute.xlu0 %v1187_v0  ;;  %1060 = vset.pattern.permute.xlu1 %v1187_v0  ;;  %v422_v4 = vld [vmem:[#allocation2 + $0x60] sm:$0xff]  ;;  %v421_v6 = vld [vmem:[#allocation2 + $0x58] sm:$0xff]  ;;  %p388_p10 = scmp.lt.s32.totalorder %s857_s17, 7 }
  0x35   : > { %s394_s21 = scalar_select %p393_p9, %s1262_s13, 1  ;;  %914 = vmatprep.subr.mxu0 %v425_v1  ;;  %v420_v9 = vld [vmem:[#allocation2 + $0x50] sm:$0xff]  ;;  %v629_v11 = vld [vmem:[#allocation5 + $0x78] sm:$0xff]  ;;  %v419_v12 = vld [vmem:[#allocation2 + $0x48] sm:$0xff]  ;;  %v572_v46 = vshrl.u32 %v571_v45, 7 }
  0x36   : > { %915 = vmatpush3.msra.mxu0 %v425_v1  ;;  %955 = vmatprep.subr.mxu1 %v629_v11  ;;  %v628_v14 = vld [vmem:[#allocation5 + $0x70] sm:$0xff]  ;;  %v418_v15 = vld [vmem:[#allocation2 + $0x40] sm:$0xff]  ;;  %v417_v17 = vld [vmem:[#allocation2 + $0x38] sm:$0xff]  ;;  %s1440_s17 = smov (!%p388_p10, %s857_s17), 7 }
  0x37   : > { %s870_s23 = sshll.u32 %s394_s21, 4  ;;  %s993_s24 = smul.u32 48, %s394_s21  ;;  %916 = vmatprep.subr.mxu0 %v424_v2  ;;  %956 = vmatpush3.msra.mxu1 %v629_v11  ;;  %v627_v19 = vld [vmem:[#allocation5 + $0x68] sm:$0xff]  ;;  %v416_v20 = vld [vmem:[#allocation2 + $0x30] sm:$0xff]  ;;  %v626_v21 = vld [vmem:[#allocation5 + $0x60] sm:$0xff]  ;;  %v581_v51 = vsub.s32 1, %v572_v46 }
  0x38   : > { %s1335_s28 = scalar_lea.vmem %s1416_s1, %s870_s23  ;;  %917 = vmatpush3.msra.mxu0 %v424_v2  ;;  %957 = vmatprep.subr.mxu1 %v628_v14  ;;  %v415_v22 = vld [vmem:[#allocation2 + $0x28] sm:$0xff]  ;;  %v625_v23 = vld [vmem:[#allocation5 + $0x58] sm:$0xff]  ;;  %v414_v24 = vld [vmem:[#allocation2 + $0x20] sm:$0xff]  ;;  %s858_s22 = sshll.u32 %s1440_s17, 3  ;;  %v573_v54 = vsub.s32 0, %v572_v46  ;;  %v593_v61 = vsub.s32 2, %v572_v46 }
  0x39   : > { %s1340_s16 = scalar_lea.vmem %s1417_s2, %s993_s24  ;;  %918 = vmatprep.subr.mxu0 %v423_v3  ;;  %v404_v5 = vld [vmem:[%s1335_s28] sm:$0xff]  ;;  %958 = vmatpush3.msra.mxu1 %v628_v14  ;;  %v624_v25 = vld [vmem:[#allocation5 + $0x50] sm:$0xff]  ;;  %v413_v26 = vld [vmem:[#allocation2 + $0x18] sm:$0xff]  ;;  %s391_s23 = scalar_lea.vmem %s1415_s0, %s858_s22 }
  0x3a   : > { %919 = vmatpush3.msra.mxu0 %v423_v3  ;;  %946 = vmatprep.mubr.f32.mxu0 %v404_v5  ;;  %v528_v7 = vld [vmem:[%s1340_s16] sm:$0xff]  ;;  %v530_v8 = vld [vmem:[%s1340_s16 + $0x10] sm:$0xff]  ;;  %v529_v10 = vld [vmem:[%s1340_s16 + $0x8] sm:$0xff]  ;;  %s871_s24 = sshll.u32 %s1262_s13, 9  ;;  %s1188_s13 = smov [#allocation7]  }
  0x3b   : > { %920 = vmatprep.subr.mxu0 %v422_v4  ;;  %536 = vperm.xlu0 %1059, %v528_v7   ;;  %v531_v13 = vld [vmem:[%s1340_s16 + $0x18] sm:$0xff]  ;;  %v532_v16 = vld [vmem:[%s1340_s16 + $0x20] sm:$0xff]  ;;  %v533_v18 = vld [vmem:[%s1340_s16 + $0x28] sm:$0xff]  ;;  %s384_s16 = sand.u32 1, %s1173_s10  }
  0x3c   : > { %921 = vmatpush3.msra.mxu0 %v422_v4  ;;  %546 = vperm.xlu1 %1060, %v530_v8   ;;  %v623_v27 = vld [vmem:[#allocation5 + $0x48] sm:$0xff]  ;;  %v412_v28 = vld [vmem:[#allocation2 + $0x10] sm:$0xff]  ;;  %v410_v30 = vld [vmem:[#allocation2] sm:$0xff]  ;;  %s856_s17 = sshll.u32 %s384_s16, 5  ;;  %s1375_s29 = scalar_lea.sflag [#allocation4], %s384_s16 }
  0x3d   : > { %922 = vmatprep.subr.mxu0 %v421_v6  ;;  %959 = vmatprep.subr.mxu1 %v627_v19  ;;  %v411_v29 = vld [vmem:[#allocation2 + $0x8] sm:$0xff]  ;;  %v406_v32 = vld [vmem:[%s391_s23] sm:$0xff]  ;;  %v408_v34 = vld [vmem:[%s391_s23 + $0x10] sm:$0xff]  ;;  %s386_s21 = scalar_lea.vmem [#allocation7], %s856_s17  ;;  %s1117_s17 = sshll.u32 %s1188_s13, 4  ;;  %s1118_s17 = int_to_ptr.vmem [resolvable:$false] %s1117_s17 }
  0x3e   : > { %923 = vmatpush3.msra.mxu0 %v421_v6  ;;  %960 = vmatpush3.msra.mxu1 %v627_v19  ;;  %v405_v31 = vld [vmem:[%s1335_s28 + $0x8] sm:$0xff]  ;;  %v409_v35 = vld [vmem:[%s391_s23 + $0x18] sm:$0xff]  ;;  %v622_v36 = vld [vmem:[#allocation5 + $0x40] sm:$0xff]  ;;  %s1373_s28 = scalar_lea.hbm %s1424_s9, %s871_s24  ;;  %s1119_s22 = scalar_lea.vmem %s1118_s17, 1024 }
  0x3f   : > { %924 = vmatprep.subr.mxu0 %v420_v9  ;;  %541 = vperm.xlu0 %1059, %v529_v10   ;;  %v407_v33 = vld [vmem:[%s391_s23 + $0x8] sm:$0xff]  ;;  %v621_v37 = vld [vmem:[#allocation5 + $0x38] sm:$0xff]  ;;  %v620_v38 = vld [vmem:[#allocation5 + $0x30] sm:$0xff]  ;;  %s740_s23 = sshll.u32 %s386_s21, 4  ;;  %s1368_s23 = int_to_ptr.vmem [resolvable:$true] %s740_s23 }
  0x40   : > { %925 = vmatpush3.msra.mxu0 %v420_v9  ;;  %551 = vperm.xlu1 %1060, %v531_v13   ;;  %v619_v39 = vld [vmem:[#allocation5 + $0x28] sm:$0xff]  ;;  %v618_v40 = vld [vmem:[#allocation5 + $0x20] sm:$0xff]  ;;  %v617_v41 = vld [vmem:[#allocation5 + $0x18] sm:$0xff]  ;;  %s1113_s14 = scalar_lea.vmem %s1368_s23, 512  ;;  %p1120_p0 = scmp.lt.s32.totalorder %s1368_s23, %s1118_s17 }
  0x41   : > { %926 = vmatprep.subr.mxu0 %v419_v12  ;;  %961 = vmatprep.subr.mxu1 %v626_v21  ;;  %v616_v42 = vld [vmem:[#allocation5 + $0x10] sm:$0xff]  ;;  %v615_v43 = vld [vmem:[#allocation5 + $0x8] sm:$0xff]  ;;  %v614_v44 = vld [vmem:[#allocation5] sm:$0xff]  ;;  %p1114_p12 = scmp.ne.s32.totalorder %s1368_s23, %s1113_s14  ;;  %p1121_p1 = scmp.lt.s32.totalorder %s1119_s22, %s1113_s14 }
  0x42   : > { %927 = vmatpush3.msra.mxu0 %v419_v12  ;;  %962 = vmatpush3.msra.mxu1 %v626_v21  ;;  %v862_v48 = vld [vmem:[%s1419_s4] ss:$0 sm:$0xff] }
  0x43   : > { %928 = vmatprep.subr.mxu0 %v418_v15  ;;  %556 = vperm.xlu0 %1059, %v532_v16   ;;  %v570_v53 = vld [vmem:[%s1420_s5] sm:$0x7]  ;;  %p1115_p8 = pnand %p1114_p12, %p1279_p5  ;;  %p1122_p3 = por %p1121_p1, %p1120_p0 }
  0x44   : > { %929 = vmatpush3.msra.mxu0 %v418_v15  ;;  %561 = vperm.xlu1 %1060, %v533_v18   ;;  %v582_v59 = vrot.slane %v570_v53, %v581_v51  ;;  %v574_v62 = vrot.slane %v570_v53, %v573_v54  ;;  %v594_v7 = vrot.slane %v570_v53, %v593_v61 }
  0x45   : > { %930 = vmatprep.subr.mxu0 %v417_v17  ;;  %963 = vmatprep.subr.mxu1 %v625_v23  ;;  %p1116_p11 = pneg %p1115_p8 }
  0x46   : > { %931 = vmatpush3.msra.mxu0 %v417_v17  ;;  %964 = vmatpush3.msra.mxu1 %v625_v23 }
  0x47   : > { %932 = vmatprep.subr.mxu0 %v416_v20  ;;  %965 = vmatprep.subr.mxu1 %v624_v25  ;;  %p1123_p2 = pnand %p1122_p3, %p1116_p11 }
  0x48   : > { %933 = vmatpush3.msra.mxu0 %v416_v20  ;;  %966 = vmatpush3.msra.mxu1 %v624_v25 }
  0x49   : > { %934 = vmatprep.subr.mxu0 %v415_v22  ;;  %967 = vmatprep.subr.mxu1 %v623_v27 }
  0x4a   : > { %935 = vmatpush3.msra.mxu0 %v415_v22  ;;  %968 = vmatpush3.msra.mxu1 %v623_v27  ;;  %v863_v22 = vld [vmem:[%s1421_s6] ss:$0 sm:$0xff] }
  0x4b   : > { %936 = vmatprep.subr.mxu0 %v414_v24  ;;  %969 = vmatprep.subr.mxu1 %v622_v36 }
  0x4c   : > { %937 = vmatpush3.msra.mxu0 %v414_v24  ;;  %970 = vmatpush3.msra.mxu1 %v622_v36 }
  0x4d   : > { %938 = vmatprep.subr.mxu0 %v413_v26  ;;  %971 = vmatprep.subr.mxu1 %v621_v37 }
  0x4e   : > { %939 = vmatpush3.msra.mxu0 %v413_v26  ;;  %972 = vmatpush3.msra.mxu1 %v621_v37 }
  0x4f   : > { %940 = vmatprep.subr.mxu0 %v412_v28  ;;  %973 = vmatprep.subr.mxu1 %v620_v38 }
  0x50   : > { %941 = vmatpush3.msra.mxu0 %v412_v28  ;;  %974 = vmatpush3.msra.mxu1 %v620_v38 }
  0x51   : > { %942 = vmatprep.subr.mxu0 %v411_v29  ;;  %975 = vmatprep.subr.mxu1 %v619_v39 }
  0x52   : > { %943 = vmatpush3.msra.mxu0 %v411_v29  ;;  %976 = vmatpush3.msra.mxu1 %v619_v39 }
  0x53   : > { %944 = vmatprep.subr.mxu0 %v410_v30  ;;  %977 = vmatprep.subr.mxu1 %v618_v40 }
  0x54   : > { %945 = vmatpush3.msra.mxu0 %v410_v30  ;;  %978 = vmatpush3.msra.mxu1 %v618_v40  ;;  %v864_v40 = vld [vmem:[%s1423_s8] ss:$0 sm:$0xff] }
  0x55   : > { %947 = vmatmul.mubr.f32.vlgmr.msra.gmra.mxu0 %v405_v31  ;;  %979 = vmatprep.subr.mxu1 %v617_v41 }
  0x56   : > { %949 = vmatprep.mubr.f32.mxu0 %v406_v32  ;;  %980 = vmatpush3.msra.mxu1 %v617_v41 }
  0x57   : > { %981 = vmatprep.subr.mxu1 %v616_v42 }
  0x58   : > { %982 = vmatpush3.msra.mxu1 %v616_v42 }
  0x59   : > { %950 = vmatmul.mubr.f32.gmra.mxu0 %v407_v33  ;;  %983 = vmatprep.subr.mxu1 %v615_v43 }
  0x5a   : > { %952 = vmatprep.mubr.f32.mxu0 %v408_v34  ;;  %984 = vmatpush3.msra.mxu1 %v615_v43 }
  0x5b   : > { %985 = vmatprep.subr.mxu1 %v614_v44 }
  0x5c   : > { %986 = vmatpush3.msra.mxu1 %v614_v44 }
  0x5d   : > { %953 = vmatmul.mubr.f32.gmra.mxu0 %v409_v35 }
  0xb6   : > { %v537_v47 = vpop.permute.xlu0 %536 }
  0xb7   : > { %v547_v49 = vpop.permute.xlu1 %546 }
  0xba   : > { %v542_v56 = vpop.permute.xlu0 %541 }
  0xbb   : > { %v552_v1 = vpop.permute.xlu1 %551 }
  0xbe   : > { %v557_v18 = vpop.permute.xlu0 %556 }
  0xbf   : > { %v562_v21 = vpop.permute.xlu1 %561 }
 0x115   : > { %v948_v50 = vpop.f32.mrf.mxu0 }
 0x116   : > { %v505_v52 = vadd.f32 %v948_v50, %v862_v48 }
 0x117   : > { %v499_v55 = vpop.f32.mrf.mxu0 }
 0x118   : > { %v500_v57 = vadd.f32 %v862_v48, %v499_v55  ;;  %v565_v58 = vmul.f32 %v542_v56, %v505_v52 }
 0x119   : > { %v951_v60 = vpop.f32.mrf.mxu0 }
 0x11a   : > { %v564_v63 = vmul.f32 %v537_v47, %v500_v57  ;;  %v515_v0 = vadd.f32 %v951_v60, %v862_v48  ;;  %v583_v5 = vmul.f32 %v582_v59, %v565_v58  ;;  %v576_v10 = vmul.f32 %v574_v62, %v565_v58 }
 0x11b   : > { %v509_v2 = vpop.f32.mrf.mxu0 }
 0x11c   : > { %v575_v3 = vmul.f32 %v574_v62, %v564_v63  ;;  %v510_v4 = vadd.f32 %v862_v48, %v509_v2  ;;  %v567_v6 = vmul.f32 %v552_v1, %v515_v0 }
 0x11d   : > { %v954_v8 = vpop.f32.mrf.mxu0 }
 0x11e   : > { %v566_v9 = vmul.f32 %v547_v49, %v510_v4  ;;  %v525_v11 = vadd.f32 %v954_v8, %v862_v48  ;;  %v587_v13 = vadd.f32 %v583_v5, %v575_v3  ;;  %v585_v19 = vmul.f32 %v582_v59, %v567_v6 }
 0x11f   : > { %v519_v12 = vpop.f32.mrf.mxu0  ;;  %v596_v20 = vmul.f32 %v594_v7, %v567_v6  ;;  %v578_v27 = vmul.f32 %v574_v62, %v567_v6 }
 0x120   : > { %v577_v14 = vmul.f32 %v574_v62, %v566_v9  ;;  %v584_v15 = vmul.f32 %v582_v59, %v566_v9  ;;  %v520_v16 = vadd.f32 %v862_v48, %v519_v12  ;;  %v595_v17 = vmul.f32 %v594_v7, %v566_v9 }
 0x121   : > { %v569_v23 = vmul.f32 %v562_v21, %v525_v11 }
 0x122   : > { %v568_v24 = vmul.f32 %v557_v18, %v520_v16  ;;  %v599_v25 = vadd.f32 %v595_v17, %v587_v13  ;;  %v588_v26 = vadd.f32 %v584_v15, %v576_v10  ;;  %v589_v28 = vadd.f32 %v585_v19, %v577_v14 }
 0x123   : > { %v598_v33 = vmul.f32 %v594_v7, %v569_v23 }
 0x124   : > { %v586_v29 = vmul.f32 %v582_v59, %v568_v24  ;;  %v597_v30 = vmul.f32 %v594_v7, %v568_v24  ;;  %v610_v31 = vadd.f32 %v863_v22, %v599_v25  ;;  %v600_v32 = vadd.f32 %v596_v20, %v588_v26 }
 0x126   : > { %v590_v34 = vadd.f32 %v586_v29, %v578_v27  ;;  %987 = vmatprep.mubr.f32.mxu1 %v610_v31  ;;  %v611_v35 = vadd.f32 %v863_v22, %v600_v32  ;;  %v601_v36 = vadd.f32 %v597_v30, %v589_v28 }
 0x128   : > { %988 = vmatmul.mubr.f32.vlgmr.msra.gmra.mxu1 %v611_v35  ;;  %v612_v37 = vadd.f32 %v863_v22, %v601_v36  ;;  %v602_v38 = vadd.f32 %v598_v33, %v590_v34 }
 0x12a   : > { %990 = vmatprep.mubr.f32.mxu1 %v612_v37  ;;  %v613_v39 = vadd.f32 %v863_v22, %v602_v38 }
 0x12c   : > { %991 = vmatmul.mubr.f32.gmra.mxu1 %v613_v39 }
 0x1e8   : > { %v989_v41 = vpop.f32.mrf.mxu1 }
 0x1e9   : > { %v709_v42 = vadd.f32 %v989_v41, %v864_v40 }
 0x1ea   : > { %v703_v43 = vpop.f32.mrf.mxu1 }
 0x1eb   : > { %723 = vst [vmem:[%s386_s21 + $0x8] sm:$0xff] %v709_v42  ;;  %v704_v44 = vadd.f32 %v864_v40, %v703_v43 }
 0x1ec   : > { %v992_v45 = vpop.f32.mrf.mxu1 }
 0x1ed   : > { %722 = vst [vmem:[%s386_s21] sm:$0xff] %v704_v44  ;;  %v719_v46 = vadd.f32 %v992_v45, %v864_v40 }
 0x1ee   : > { %v713_v47 = vpop.f32.mrf.mxu1 }
 0x1ef   : > { %725 = vst [vmem:[%s386_s21 + $0x18] sm:$0xff] %v719_v46  ;;  %v714_v48 = vadd.f32 %v864_v40, %v713_v47 }
 0x1f1   : > { %724 = vst [vmem:[%s386_s21 + $0x10] sm:$0xff] %v714_v48 }
 0x1f2   : > { %1126 = shalt.err (!%p1123_p2)
}
 0x1f3   : > { %s1127_s16 = scalar_lea.hbm %s1373_s28, 512  ;;  %s1131_s24 = scalar_lea.hbm %s1424_s9, 1024 }
 0x1f4   : > { %p1128_p4 = scmp.ne.s32.totalorder %s1373_s28, %s1127_s16  ;;  %p1132_p6 = scmp.lt.s32.totalorder %s1373_s28, %s1424_s9 }
 0x1f5   : > { %p1133_p9 = scmp.lt.s32.totalorder %s1131_s24, %s1127_s16 }
 0x1f6   : > { %p1129_p13 = pnand %p1128_p4, %p1279_p5 }
 0x1f7   : > { %p1134_p10 = por %p1133_p9, %p1132_p6 }
 0x1f8   : > { %p1130_p7 = pneg %p1129_p13 }
 0x1fa   : > { %p1135_p12 = pnand %p1134_p10, %p1130_p7 }
 0x1fc   : > { %1138 = shalt.err (!%p1135_p12)
}
 0x1fd   : > { %s1189_s14 = smov 128   ;;  %s1190_s13 = smov 8  }
 0x1fe   : > { %1002 = dma.vmem_to_hbm [thread:$0]  (%p1279_p5), %s1368_s23, 512, %s1373_s28, %s1375_s29, %s1189_s14, %s1189_s14, %s1190_s13  }
 0x1ff PF: > { %p1019_p8 = scmp.ge.s32.totalorder %s1181_s12, 2  ;;  %s755_s17 = sand.u32 1, %s1169_s30  }
 0x200   : > { %p1434_p11 = scmp.ne.s32.totalorder %s1427_s20, 0  ;;  %s756_s22 = scalar_lea.sflag [#allocation4], %s755_s17 }
 0x202   : > { %p1012_p0 = pnand %p1019_p8, %p1434_p11 }
 0x204   : > { %p1013_p1 = pneg %p1012_p0 }
 0x206   : > { %1164 = dma.done.wait (%p1013_p1), %s756_s22, 512  }
 0x207   : > { %1166 = vsyncadd (%p1013_p1), %s756_s22, 4294966784  ;;  %p21_p3 = scmp.ge.s32.totalorder %s1266_s15, 4   ;;  %s1435_s30 = smov %s1173_s10 }
 0x208   : > { %s1436_s10 = smov %s1177_s11  ;;  %s1437_s11 = smov %s1277_s18 }
 0x209   : > { %s1438_s12 = smov %s1266_s15  ;;  %23 = sbr.rel (!%p21_p3) target bundleno = 5 (0x5), region = 106 }
 0x20e   :  { %761 = vsyncpa [#allocation3], 1 }
 0x20f   :  { %763 = vsyncpa [#allocation3 + $0x1], 1 }
 0x210   :  { %764 = vsyncpa [#allocation6], 1 }
 0x211   :  { %765 = vsyncpa [#allocation4], 1 }
 0x212   :  { %767 = vsyncpa [#allocation4 + $0x1], 1 }

// kernel: tpu_custom_call.1
= control target key start
LH: loop header
LB: loop body
LE: loop exit
PB: predicated region body
PF: predicated region fallthrough
CT: control target
= control target key end

     0   :  { %14 = vsyncpa [#allocation3], 0  ;;  %s1415_s0 = inlined_call_operand.vmem [shape: f32[64,128], index: 0, kind: input, shape index: {}]   ;;  %s1416_s1 = inlined_call_operand.vmem [shape: f32[2,16,128], index: 1, kind: input, shape index: {}]   ;;  %s1417_s2 = inlined_call_operand.vmem [shape: f32[2,48,1], index: 2, kind: input, shape index: {}]   ;;  %s1418_s3 = inlined_call_operand.hbm [shape: f32[128,128], index: 3, kind: input, shape index: {}]   ;;  %s1419_s4 = inlined_call_operand.vmem [shape: f32[1,128], index: 4, kind: input, shape index: {}]   ;;  %s1420_s5 = inlined_call_operand.vmem [shape: f32[3,128], index: 5, kind: input, shape index: {}]   ;;  %s1421_s6 = inlined_call_operand.vmem [shape: f32[1,128], index: 6, kind: input, shape index: {}]   ;;  %s1422_s7 = inlined_call_operand.hbm [shape: f32[128,128], index: 7, kind: input, shape index: {}]   ;;  %s1423_s8 = inlined_call_operand.vmem [shape: f32[1,128], index: 8, kind: input, shape index: {}]   ;;  %s1424_s9 = inlined_call_operand.hbm [shape: f32[64,128], index: 9, kind: output, shape index: {}]  }
   0x1   :  { %15 = vsyncpa [#allocation6], 0 }
   0x2   :  { %16 = vsyncpa [#allocation4], 0 }
   0x3   :  { %18 = vsyncpa [#allocation4 + $0x1], 0  ;;  %s1241_s30 = smov 0   ;;  %s1243_s10 = smov 0  }
   0x4   :  { %s1245_s11 = smov 0   ;;  %s1247_s12 = smov 0  }
   0x5 LB: > { %s1262_s13 = sadd.s32 4294967295, %s1181_s12   ;;  %s848_s14 = sadd.s32 4294967294, %s1181_s12   ;;  %s1181_s12 = sphi %s1247_s12, %s1438_s12   ;;  %s1177_s11 = sphi %s1245_s11, %s1437_s11   ;;  %s1173_s10 = sphi %s1243_s10, %s1436_s10   ;;  %s1169_s30 = sphi %s1241_s30, %s1435_s30  }
   0x6   : > { %s1266_s15 = sadd.s32 1, %s1181_s12   ;;  %s235_s16 = sadd.s32 1, %s1177_s11 }
   0x7   : > { %s232_s17 = ssub.s32 %s1181_s12, %s1266_s15  ;;  %p245_p0 = scmp.ne.s32.totalorder %s1177_s11, %s1173_s10 }
   0x8   : > { %p233_p1 = scmp.eq.s32.totalorder %s232_s17, 0  ;;  %p246_p2 = scmp.eq.s32.totalorder %s1262_s13, 1 }
   0x9   : > { %p251_p3 = scmp.ne.s32.totalorder %s1173_s10, %s1169_s30  ;;  %p252_p4 = scmp.eq.s32.totalorder %s848_s14, 1 }
   0xa   : > { %s1277_s18 = scalar_select %p233_p1, %s1177_s11, %s235_s16  }
   0xb   : > { %p1279_p5 = por %p246_p2, %p245_p0  ;;  %p1283_p6 = por %p252_p4, %p251_p3 }
   0xc   : > { %p849_p7 = scmp.ge.s32.totalorder %s1181_s12, 1  ;;  %p259_p8 = scmp.lt.s32.totalorder %s1181_s12, 3 }
   0xd   : > { %s1427_s20 = scalar_select %p1283_p6, 1, 0 }
   0xe   : > { %p1425_p9 = scmp.eq.s32.totalorder %s1262_s13, 0  ;;  %p1290_p10 = pnand %p849_p7, %p259_p8 }
   0xf   : > { %s1183_s22 = smov [#allocation2]   ;;  %s1184_s25 = smov [#allocation5]  }
  0x10   : > { %s271_s23 = sshll.u32 %s1183_s22, 4  ;;  %p1004_p11 = pneg %p1290_p10  ;;  %s272_s23 = int_to_ptr.vmem [resolvable:$true] %s271_s23 }
  0x11   : > { %s293_s26 = sshll.u32 %s1184_s25, 4  ;;  %s1072_s27 = scalar_lea.vmem %s272_s23, 2048  ;;  %s294_s26 = int_to_ptr.vmem [resolvable:$true] %s293_s26 }
  0x12   : > { %p1298_p12 = pnand %p1425_p9, %p1004_p11  ;;  %p1073_p0 = scmp.ne.s32.totalorder %s272_s23, %s1072_s27 }
  0x13   : > { %p1080_p3 = scmp.lt.s32.totalorder %s272_s23, %s272_s23  ;;  %p1081_p4 = scmp.lt.s32.totalorder %s1072_s27, %s1072_s27 }
  0x14   : > { %p1063_p13 = pneg %p1298_p12 }
  0x15   : > { %p1082_p7 = por %p1081_p4, %p1080_p3 }
  0x16   : > { %p1075_p1 = pnand %p1073_p0, %p1063_p13 }
  0x18   : > { %p1076_p2 = pneg %p1075_p1 }
  0x1a   : > { %p1083_p8 = pnand %p1082_p7, %p1076_p2 }
  0x1c   : > { %1086 = shalt.err (!%p1083_p8)
}
  0x1d   : > { %s1185_s28 = smov 128   ;;  %s1186_s29 = smov 8  }
  0x1e   : > { %1007 = dma.hbm_to_vmem [thread:$0]  (!%p1298_p12), %s1418_s3, 2048, %s272_s23, [#allocation3], %s1185_s28, %s1185_s28, %s1186_s29  }
  0x1f   : > { %s1098_s17 = scalar_lea.vmem %s294_s26, 2048  ;;  %p1106_p9 = scmp.lt.s32.totalorder %s294_s26, %s294_s26 }
  0x20   : > { %p1099_p11 = scmp.ne.s32.totalorder %s294_s26, %s1098_s17  ;;  %p1107_p6 = scmp.lt.s32.totalorder %s1098_s17, %s1098_s17 }
  0x22   : > { %p1101_p0 = pnand %p1099_p11, %p1063_p13  ;;  %p1108_p3 = por %p1107_p6, %p1106_p9 }
  0x24   : > { %p1102_p1 = pneg %p1101_p0 }
  0x26   : > { %p1109_p2 = pnand %p1108_p3, %p1102_p1 }
  0x28   : > { %1112 = shalt.err (!%p1109_p2)
}
  0x29   : > { %1010 = dma.hbm_to_vmem [thread:$0]  (!%p1298_p12), %s1422_s7, 2048, %s294_s26, [#allocation6], %s1185_s28, %s1185_s28, %s1186_s29  }
  0x2a   : > { %337 = sbr.rel (%p1290_p10) target bundleno = 511 (0x1ff), region = 56  ;;  %p1430_p4 = scmp.eq.s32.totalorder (!%p1290_p10), %s1262_s13, 0 }
  0x2f   : > { %1156 = dma.done.wait (%p1430_p4), [#allocation3], 2048   ;;  %p1431_p13 = pmov %p1430_p4 }
  0x30   : > { %p1432_p7 = pmov %p1430_p4 }
  0x31   : > { %1158 = vsyncadd (%p1431_p13), [#allocation3], 4294965248 }
  0x32   : > { %1160 = dma.done.wait (%p1432_p7), [#allocation6], 2048   ;;  %p1433_p6 = pmov %p1430_p4 }
  0x33   : > { %p393_p9 = scmp.lt.s32.totalorder %s1262_s13, 1  ;;  %v1187_v0 = vmov 0   ;;  %v425_v1 = vld [vmem:[#allocation2 + $0x78] sm:$0xff]  ;;  %v424_v2 = vld [vmem:[#allocation2 + $0x70] sm:$0xff]  ;;  %v423_v3 = vld [vmem:[#allocation2 + $0x68] sm:$0xff]  ;;  %s857_s17 = sshll.u32 %s1262_s13, 2  ;;  %v571_v45 = vlaneseq }
  0x34   : > { %1162 = vsyncadd (%p1433_p6), [#allocation6], 4294965248  ;;  %1059 = vset.pattern.permute.xlu0 %v1187_v0  ;;  %1060 = vset.pattern.permute.xlu1 %v1187_v0  ;;  %v422_v4 = vld [vmem:[#allocation2 + $0x60] sm:$0xff]  ;;  %v421_v6 = vld [vmem:[#allocation2 + $0x58] sm:$0xff]  ;;  %p388_p10 = scmp.lt.s32.totalorder %s857_s17, 7 }
  0x35   : > { %s394_s21 = scalar_select %p393_p9, %s1262_s13, 1  ;;  %914 = vmatprep.subr.mxu0 %v425_v1  ;;  %v420_v9 = vld [vmem:[#allocation2 + $0x50] sm:$0xff]  ;;  %v629_v11 = vld [vmem:[#allocation5 + $0x78] sm:$0xff]  ;;  %v419_v12 = vld [vmem:[#allocation2 + $0x48] sm:$0xff]  ;;  %v572_v46 = vshrl.u32 %v571_v45, 7 }
  0x36   : > { %915 = vmatpush3.msra.mxu0 %v425_v1  ;;  %955 = vmatprep.subr.mxu1 %v629_v11  ;;  %v628_v14 = vld [vmem:[#allocation5 + $0x70] sm:$0xff]  ;;  %v418_v15 = vld [vmem:[#allocation2 + $0x40] sm:$0xff]  ;;  %v417_v17 = vld [vmem:[#allocation2 + $0x38] sm:$0xff]  ;;  %s1440_s17 = smov (!%p388_p10, %s857_s17), 7 }
  0x37   : > { %s870_s23 = sshll.u32 %s394_s21, 4  ;;  %s993_s24 = smul.u32 48, %s394_s21  ;;  %916 = vmatprep.subr.mxu0 %v424_v2  ;;  %956 = vmatpush3.msra.mxu1 %v629_v11  ;;  %v627_v19 = vld [vmem:[#allocation5 + $0x68] sm:$0xff]  ;;  %v416_v20 = vld [vmem:[#allocation2 + $0x30] sm:$0xff]  ;;  %v626_v21 = vld [vmem:[#allocation5 + $0x60] sm:$0xff]  ;;  %v581_v51 = vsub.s32 1, %v572_v46 }
  0x38   : > { %s1335_s28 = scalar_lea.vmem %s1416_s1, %s870_s23  ;;  %917 = vmatpush3.msra.mxu0 %v424_v2  ;;  %957 = vmatprep.subr.mxu1 %v628_v14  ;;  %v415_v22 = vld [vmem:[#allocation2 + $0x28] sm:$0xff]  ;;  %v625_v23 = vld [vmem:[#allocation5 + $0x58] sm:$0xff]  ;;  %v414_v24 = vld [vmem:[#allocation2 + $0x20] sm:$0xff]  ;;  %s858_s22 = sshll.u32 %s1440_s17, 3  ;;  %v573_v54 = vsub.s32 0, %v572_v46  ;;  %v593_v61 = vsub.s32 2, %v572_v46 }
  0x39   : > { %s1340_s16 = scalar_lea.vmem %s1417_s2, %s993_s24  ;;  %918 = vmatprep.subr.mxu0 %v423_v3  ;;  %v404_v5 = vld [vmem:[%s1335_s28] sm:$0xff]  ;;  %958 = vmatpush3.msra.mxu1 %v628_v14  ;;  %v624_v25 = vld [vmem:[#allocation5 + $0x50] sm:$0xff]  ;;  %v413_v26 = vld [vmem:[#allocation2 + $0x18] sm:$0xff]  ;;  %s391_s23 = scalar_lea.vmem %s1415_s0, %s858_s22 }
  0x3a   : > { %919 = vmatpush3.msra.mxu0 %v423_v3  ;;  %946 = vmatprep.mubr.f32.mxu0 %v404_v5  ;;  %v528_v7 = vld [vmem:[%s1340_s16] sm:$0xff]  ;;  %v530_v8 = vld [vmem:[%s1340_s16 + $0x10] sm:$0xff]  ;;  %v529_v10 = vld [vmem:[%s1340_s16 + $0x8] sm:$0xff]  ;;  %s871_s24 = sshll.u32 %s1262_s13, 9  ;;  %s1188_s13 = smov [#allocation7]  }
  0x3b   : > { %920 = vmatprep.subr.mxu0 %v422_v4  ;;  %536 = vperm.xlu0 %1059, %v528_v7   ;;  %v531_v13 = vld [vmem:[%s1340_s16 + $0x18] sm:$0xff]  ;;  %v532_v16 = vld [vmem:[%s1340_s16 + $0x20] sm:$0xff]  ;;  %v533_v18 = vld [vmem:[%s1340_s16 + $0x28] sm:$0xff]  ;;  %s384_s16 = sand.u32 1, %s1173_s10  }
  0x3c   : > { %921 = vmatpush3.msra.mxu0 %v422_v4  ;;  %546 = vperm.xlu1 %1060, %v530_v8   ;;  %v623_v27 = vld [vmem:[#allocation5 + $0x48] sm:$0xff]  ;;  %v412_v28 = vld [vmem:[#allocation2 + $0x10] sm:$0xff]  ;;  %v410_v30 = vld [vmem:[#allocation2] sm:$0xff]  ;;  %s856_s17 = sshll.u32 %s384_s16, 5  ;;  %s1375_s29 = scalar_lea.sflag [#allocation4], %s384_s16 }
  0x3d   : > { %922 = vmatprep.subr.mxu0 %v421_v6  ;;  %959 = vmatprep.subr.mxu1 %v627_v19  ;;  %v411_v29 = vld [vmem:[#allocation2 + $0x8] sm:$0xff]  ;;  %v406_v32 = vld [vmem:[%s391_s23] sm:$0xff]  ;;  %v408_v34 = vld [vmem:[%s391_s23 + $0x10] sm:$0xff]  ;;  %s386_s21 = scalar_lea.vmem [#allocation7], %s856_s17  ;;  %s1117_s17 = sshll.u32 %s1188_s13, 4  ;;  %s1118_s17 = int_to_ptr.vmem [resolvable:$false] %s1117_s17 }
  0x3e   : > { %923 = vmatpush3.msra.mxu0 %v421_v6  ;;  %960 = vmatpush3.msra.mxu1 %v627_v19  ;;  %v405_v31 = vld [vmem:[%s1335_s28 + $0x8] sm:$0xff]  ;;  %v409_v35 = vld [vmem:[%s391_s23 + $0x18] sm:$0xff]  ;;  %v622_v36 = vld [vmem:[#allocation5 + $0x40] sm:$0xff]  ;;  %s1373_s28 = scalar_lea.hbm %s1424_s9, %s871_s24  ;;  %s1119_s22 = scalar_lea.vmem %s1118_s17, 1024 }
  0x3f   : > { %924 = vmatprep.subr.mxu0 %v420_v9  ;;  %541 = vperm.xlu0 %1059, %v529_v10   ;;  %v407_v33 = vld [vmem:[%s391_s23 + $0x8] sm:$0xff]  ;;  %v621_v37 = vld [vmem:[#allocation5 + $0x38] sm:$0xff]  ;;  %v620_v38 = vld [vmem:[#allocation5 + $0x30] sm:$0xff]  ;;  %s740_s23 = sshll.u32 %s386_s21, 4  ;;  %s1368_s23 = int_to_ptr.vmem [resolvable:$true] %s740_s23 }
  0x40   : > { %925 = vmatpush3.msra.mxu0 %v420_v9  ;;  %551 = vperm.xlu1 %1060, %v531_v13   ;;  %v619_v39 = vld [vmem:[#allocation5 + $0x28] sm:$0xff]  ;;  %v618_v40 = vld [vmem:[#allocation5 + $0x20] sm:$0xff]  ;;  %v617_v41 = vld [vmem:[#allocation5 + $0x18] sm:$0xff]  ;;  %s1113_s14 = scalar_lea.vmem %s1368_s23, 512  ;;  %p1120_p0 = scmp.lt.s32.totalorder %s1368_s23, %s1118_s17 }
  0x41   : > { %926 = vmatprep.subr.mxu0 %v419_v12  ;;  %961 = vmatprep.subr.mxu1 %v626_v21  ;;  %v616_v42 = vld [vmem:[#allocation5 + $0x10] sm:$0xff]  ;;  %v615_v43 = vld [vmem:[#allocation5 + $0x8] sm:$0xff]  ;;  %v614_v44 = vld [vmem:[#allocation5] sm:$0xff]  ;;  %p1114_p12 = scmp.ne.s32.totalorder %s1368_s23, %s1113_s14  ;;  %p1121_p1 = scmp.lt.s32.totalorder %s1119_s22, %s1113_s14 }
  0x42   : > { %927 = vmatpush3.msra.mxu0 %v419_v12  ;;  %962 = vmatpush3.msra.mxu1 %v626_v21  ;;  %v862_v48 = vld [vmem:[%s1419_s4] ss:$0 sm:$0xff] }
  0x43   : > { %928 = vmatprep.subr.mxu0 %v418_v15  ;;  %556 = vperm.xlu0 %1059, %v532_v16   ;;  %v570_v53 = vld [vmem:[%s1420_s5] sm:$0x7]  ;;  %p1115_p8 = pnand %p1114_p12, %p1279_p5  ;;  %p1122_p3 = por %p1121_p1, %p1120_p0 }
  0x44   : > { %929 = vmatpush3.msra.mxu0 %v418_v15  ;;  %561 = vperm.xlu1 %1060, %v533_v18   ;;  %v582_v59 = vrot.slane %v570_v53, %v581_v51  ;;  %v574_v62 = vrot.slane %v570_v53, %v573_v54  ;;  %v594_v7 = vrot.slane %v570_v53, %v593_v61 }
  0x45   : > { %930 = vmatprep.subr.mxu0 %v417_v17  ;;  %963 = vmatprep.subr.mxu1 %v625_v23  ;;  %p1116_p11 = pneg %p1115_p8 }
  0x46   : > { %931 = vmatpush3.msra.mxu0 %v417_v17  ;;  %964 = vmatpush3.msra.mxu1 %v625_v23 }
  0x47   : > { %932 = vmatprep.subr.mxu0 %v416_v20  ;;  %965 = vmatprep.subr.mxu1 %v624_v25  ;;  %p1123_p2 = pnand %p1122_p3, %p1116_p11 }
  0x48   : > { %933 = vmatpush3.msra.mxu0 %v416_v20  ;;  %966 = vmatpush3.msra.mxu1 %v624_v25 }
  0x49   : > { %934 = vmatprep.subr.mxu0 %v415_v22  ;;  %967 = vmatprep.subr.mxu1 %v623_v27 }
  0x4a   : > { %935 = vmatpush3.msra.mxu0 %v415_v22  ;;  %968 = vmatpush3.msra.mxu1 %v623_v27  ;;  %v863_v22 = vld [vmem:[%s1421_s6] ss:$0 sm:$0xff] }
  0x4b   : > { %936 = vmatprep.subr.mxu0 %v414_v24  ;;  %969 = vmatprep.subr.mxu1 %v622_v36 }
  0x4c   : > { %937 = vmatpush3.msra.mxu0 %v414_v24  ;;  %970 = vmatpush3.msra.mxu1 %v622_v36 }
  0x4d   : > { %938 = vmatprep.subr.mxu0 %v413_v26  ;;  %971 = vmatprep.subr.mxu1 %v621_v37 }
  0x4e   : > { %939 = vmatpush3.msra.mxu0 %v413_v26  ;;  %972 = vmatpush3.msra.mxu1 %v621_v37 }
  0x4f   : > { %940 = vmatprep.subr.mxu0 %v412_v28  ;;  %973 = vmatprep.subr.mxu1 %v620_v38 }
  0x50   : > { %941 = vmatpush3.msra.mxu0 %v412_v28  ;;  %974 = vmatpush3.msra.mxu1 %v620_v38 }
  0x51   : > { %942 = vmatprep.subr.mxu0 %v411_v29  ;;  %975 = vmatprep.subr.mxu1 %v619_v39 }
  0x52   : > { %943 = vmatpush3.msra.mxu0 %v411_v29  ;;  %976 = vmatpush3.msra.mxu1 %v619_v39 }
  0x53   : > { %944 = vmatprep.subr.mxu0 %v410_v30  ;;  %977 = vmatprep.subr.mxu1 %v618_v40 }
  0x54   : > { %945 = vmatpush3.msra.mxu0 %v410_v30  ;;  %978 = vmatpush3.msra.mxu1 %v618_v40  ;;  %v864_v40 = vld [vmem:[%s1423_s8] ss:$0 sm:$0xff] }
  0x55   : > { %947 = vmatmul.mubr.f32.vlgmr.msra.gmra.mxu0 %v405_v31  ;;  %979 = vmatprep.subr.mxu1 %v617_v41 }
  0x56   : > { %949 = vmatprep.mubr.f32.mxu0 %v406_v32  ;;  %980 = vmatpush3.msra.mxu1 %v617_v41 }
  0x57   : > { %981 = vmatprep.subr.mxu1 %v616_v42 }
  0x58   : > { %982 = vmatpush3.msra.mxu1 %v616_v42 }
  0x59   : > { %950 = vmatmul.mubr.f32.gmra.mxu0 %v407_v33  ;;  %983 = vmatprep.subr.mxu1 %v615_v43 }
  0x5a   : > { %952 = vmatprep.mubr.f32.mxu0 %v408_v34  ;;  %984 = vmatpush3.msra.mxu1 %v615_v43 }
  0x5b   : > { %985 = vmatprep.subr.mxu1 %v614_v44 }
  0x5c   : > { %986 = vmatpush3.msra.mxu1 %v614_v44 }
  0x5d   : > { %953 = vmatmul.mubr.f32.gmra.mxu0 %v409_v35 }
  0xb6   : > { %v537_v47 = vpop.permute.xlu0 %536 }
  0xb7   : > { %v547_v49 = vpop.permute.xlu1 %546 }
  0xba   : > { %v542_v56 = vpop.permute.xlu0 %541 }
  0xbb   : > { %v552_v1 = vpop.permute.xlu1 %551 }
  0xbe   : > { %v557_v18 = vpop.permute.xlu0 %556 }
  0xbf   : > { %v562_v21 = vpop.permute.xlu1 %561 }
 0x115   : > { %v948_v50 = vpop.f32.mrf.mxu0 }
 0x116   : > { %v505_v52 = vadd.f32 %v948_v50, %v862_v48 }
 0x117   : > { %v499_v55 = vpop.f32.mrf.mxu0 }
 0x118   : > { %v500_v57 = vadd.f32 %v862_v48, %v499_v55  ;;  %v565_v58 = vmul.f32 %v542_v56, %v505_v52 }
 0x119   : > { %v951_v60 = vpop.f32.mrf.mxu0 }
 0x11a   : > { %v564_v63 = vmul.f32 %v537_v47, %v500_v57  ;;  %v515_v0 = vadd.f32 %v951_v60, %v862_v48  ;;  %v583_v5 = vmul.f32 %v582_v59, %v565_v58  ;;  %v576_v10 = vmul.f32 %v574_v62, %v565_v58 }
 0x11b   : > { %v509_v2 = vpop.f32.mrf.mxu0 }
 0x11c   : > { %v575_v3 = vmul.f32 %v574_v62, %v564_v63  ;;  %v510_v4 = vadd.f32 %v862_v48, %v509_v2  ;;  %v567_v6 = vmul.f32 %v552_v1, %v515_v0 }
 0x11d   : > { %v954_v8 = vpop.f32.mrf.mxu0 }
 0x11e   : > { %v566_v9 = vmul.f32 %v547_v49, %v510_v4  ;;  %v525_v11 = vadd.f32 %v954_v8, %v862_v48  ;;  %v587_v13 = vadd.f32 %v583_v5, %v575_v3  ;;  %v585_v19 = vmul.f32 %v582_v59, %v567_v6 }
 0x11f   : > { %v519_v12 = vpop.f32.mrf.mxu0  ;;  %v596_v20 = vmul.f32 %v594_v7, %v567_v6  ;;  %v578_v27 = vmul.f32 %v574_v62, %v567_v6 }
 0x120   : > { %v577_v14 = vmul.f32 %v574_v62, %v566_v9  ;;  %v584_v15 = vmul.f32 %v582_v59, %v566_v9  ;;  %v520_v16 = vadd.f32 %v862_v48, %v519_v12  ;;  %v595_v17 = vmul.f32 %v594_v7, %v566_v9 }
 0x121   : > { %v569_v23 = vmul.f32 %v562_v21, %v525_v11 }
 0x122   : > { %v568_v24 = vmul.f32 %v557_v18, %v520_v16  ;;  %v599_v25 = vadd.f32 %v595_v17, %v587_v13  ;;  %v588_v26 = vadd.f32 %v584_v15, %v576_v10  ;;  %v589_v28 = vadd.f32 %v585_v19, %v577_v14 }
 0x123   : > { %v598_v33 = vmul.f32 %v594_v7, %v569_v23 }
 0x124   : > { %v586_v29 = vmul.f32 %v582_v59, %v568_v24  ;;  %v597_v30 = vmul.f32 %v594_v7, %v568_v24  ;;  %v610_v31 = vadd.f32 %v863_v22, %v599_v25  ;;  %v600_v32 = vadd.f32 %v596_v20, %v588_v26 }
 0x126   : > { %v590_v34 = vadd.f32 %v586_v29, %v578_v27  ;;  %987 = vmatprep.mubr.f32.mxu1 %v610_v31  ;;  %v611_v35 = vadd.f32 %v863_v22, %v600_v32  ;;  %v601_v36 = vadd.f32 %v597_v30, %v589_v28 }
 0x128   : > { %988 = vmatmul.mubr.f32.vlgmr.msra.gmra.mxu1 %v611_v35  ;;  %v612_v37 = vadd.f32 %v863_v22, %v601_v36  ;;  %v602_v38 = vadd.f32 %v598_v33, %v590_v34 }
 0x12a   : > { %990 = vmatprep.mubr.f32.mxu1 %v612_v37  ;;  %v613_v39 = vadd.f32 %v863_v22, %v602_v38 }
 0x12c   : > { %991 = vmatmul.mubr.f32.gmra.mxu1 %v613_v39 }
 0x1e8   : > { %v989_v41 = vpop.f32.mrf.mxu1 }
 0x1e9   : > { %v709_v42 = vadd.f32 %v989_v41, %v864_v40 }
 0x1ea   : > { %v703_v43 = vpop.f32.mrf.mxu1 }
 0x1eb   : > { %723 = vst [vmem:[%s386_s21 + $0x8] sm:$0xff] %v709_v42  ;;  %v704_v44 = vadd.f32 %v864_v40, %v703_v43 }
 0x1ec   : > { %v992_v45 = vpop.f32.mrf.mxu1 }
 0x1ed   : > { %722 = vst [vmem:[%s386_s21] sm:$0xff] %v704_v44  ;;  %v719_v46 = vadd.f32 %v992_v45, %v864_v40 }
 0x1ee   : > { %v713_v47 = vpop.f32.mrf.mxu1 }
 0x1ef   : > { %725 = vst [vmem:[%s386_s21 + $0x18] sm:$0xff] %v719_v46  ;;  %v714_v48 = vadd.f32 %v864_v40, %v713_v47 }
 0x1f1   : > { %724 = vst [vmem:[%s386_s21 + $0x10] sm:$0xff] %v714_v48 }
 0x1f2   : > { %1126 = shalt.err (!%p1123_p2)
}
 0x1f3   : > { %s1127_s16 = scalar_lea.hbm %s1373_s28, 512  ;;  %s1131_s24 = scalar_lea.hbm %s1424_s9, 1024 }
 0x1f4   : > { %p1128_p4 = scmp.ne.s32.totalorder %s1373_s28, %s1127_s16  ;;  %p1132_p6 = scmp.lt.s32.totalorder %s1373_s28, %s1424_s9 }
 0x1f5   : > { %p1133_p9 = scmp.lt.s32.totalorder %s1131_s24, %s1127_s16 }
 0x1f6   : > { %p1129_p13 = pnand %p1128_p4, %p1279_p5 }
 0x1f7   : > { %p1134_p10 = por %p1133_p9, %p1132_p6 }
 0x1f8   : > { %p1130_p7 = pneg %p1129_p13 }
 0x1fa   : > { %p1135_p12 = pnand %p1134_p10, %p1130_p7 }
 0x1fc   : > { %1138 = shalt.err (!%p1135_p12)
}
 0x1fd   : > { %s1189_s14 = smov 128   ;;  %s1190_s13 = smov 8  }
 0x1fe   : > { %1002 = dma.vmem_to_hbm [thread:$0]  (%p1279_p5), %s1368_s23, 512, %s1373_s28, %s1375_s29, %s1189_s14, %s1189_s14, %s1190_s13  }
 0x1ff PF: > { %p1019_p8 = scmp.ge.s32.totalorder %s1181_s12, 2  ;;  %s755_s17 = sand.u32 1, %s1169_s30  }
 0x200   : > { %p1434_p11 = scmp.ne.s32.totalorder %s1427_s20, 0  ;;  %s756_s22 = scalar_lea.sflag [#allocation4], %s755_s17 }
 0x202   : > { %p1012_p0 = pnand %p1019_p8, %p1434_p11 }
 0x204   : > { %p1013_p1 = pneg %p1012_p0 }
 0x206   : > { %1164 = dma.done.wait (%p1013_p1), %s756_s22, 512  }
 0x207   : > { %1166 = vsyncadd (%p1013_p1), %s756_s22, 4294966784  ;;  %p21_p3 = scmp.ge.s32.totalorder %s1266_s15, 4   ;;  %s1435_s30 = smov %s1173_s10 }
 0x208   : > { %s1436_s10 = smov %s1177_s11  ;;  %s1437_s11 = smov %s1277_s18 }
 0x209   : > { %s1438_s12 = smov %s1266_s15  ;;  %23 = sbr.rel (!%p21_p3) target bundleno = 5 (0x5), region = 106 }
 0x20e   :  { %761 = vsyncpa [#allocation3], 1 }
 0x20f   :  { %763 = vsyncpa [#allocation3 + $0x1], 1 }
 0x210   :  { %764 = vsyncpa [#allocation6], 1 }
 0x211   :  { %765 = vsyncpa [#allocation4], 1 }
 0x212   :  { %767 = vsyncpa [#allocation4 + $0x1], 1 }

</bundles_post_ra>
